<compile_context>
chip_gen: v7x
topology: tpu7x:2x2x1
jax: 0.10.0
libtpu: 0.0.40
codegen_flags: <defaults>
</compile_context>

<pallas_src>
import math

import numpy as np
import jax
import jax.numpy as jnp
from jax import lax
from jax.experimental import pallas as pl
from jax.experimental.pallas import tpu as pltpu


def _pick_tb(batch_padded: int, lane_len: int, in_itemsize: int) -> int:
    """Batch rows per grid step, sized against this generation's VMEM."""
    lane_pad = -(-lane_len // 128) * 128
    try:
        vmem_bytes = pltpu.get_tpu_info().vmem_capacity_bytes
    except Exception:  # pragma: no cover - conservative fallback
        vmem_bytes = 64 << 20
    budget = vmem_bytes // 6  # headroom for temporaries + pipeline buffers
    # Per batch row: y_true + y_pred (double buffered) + doc_len column
    # (lane-padded to 128, double buffered) + ~4 f32 elementwise temporaries.
    per_row = (2 * 2 * lane_pad * in_itemsize) + (2 * 128 * 4) + (4 * lane_pad * 4)
    tb = budget // max(per_row, 1)
    tb = max(8, (tb // 8) * 8)
    tb = min(tb, 2048)
    tb = min(tb, max(8, (batch_padded // 8) * 8))
    # TODO(synk): for very large max_doc_len, additionally tile the D*D pair
    # axis (second grid dimension) instead of loading full rows per element.
    return int(tb)


def _make_kernel(tb: int, batch_padded: int):
    needs_batch_mask = (batch_padded % tb) != 0  # static decision

    def kernel(lane_m_ref, lane_w_ref, dl_ref, yt_ref, yp_ref, out_ref):
        s = pl.program_id(0)

        yt = yt_ref[...]                          # (TB, L) native dtype
        yp = yp_ref[...].astype(jnp.float32)      # (TB, L)
        lane_m = lane_m_ref[...]                  # (1, L) int32: max(r, c) per lane
        lane_w = lane_w_ref[...]                  # (1, L) f32: 1.0 / diminish per lane
        dl = dl_ref[...]                          # (TB, 1) int32

        # getmask(): keep (r, c) pairs with max(r, c) < doc_len.
        valid = lane_m < dl                       # (TB, L) via broadcast
        sel = valid & (yt == 1)                   # label selects the term

        if needs_batch_mask:
            bb = lax.broadcasted_iota(jnp.int32, yt.shape, 0)
            sel = sel & ((s * tb + bb) < batch_padded)

        # One log per interleaved element; where() discards masked/garbage spots.
        contrib = jnp.where(sel, lane_w * jnp.log(yp), 0.0)

        # Per-lane partial sums only; the tiny cross-step/cross-lane reduction
        # and the normalization happen in XLA after the kernel.
        out_ref[...] = jnp.sum(contrib, axis=0, keepdims=True).reshape(out_ref.shape)

    return kernel


def ce_loss_pair_pallas(y_true, y_pred, doc_len, diminish_factor):
    """y_true, y_pred: [B, D*D, 2]; doc_len: [B] int; returns scalar loss."""
    B, DD, C = y_true.shape
    assert C == 2
    D = int(round(math.sqrt(DD)))
    assert D * D == DD
    L = DD * C                                     # interleaved row length

    yt = jnp.reshape(y_true, (B, L))               # contiguous reshape, no copy
    yp = jnp.reshape(y_pred, (B, L))
    doc_len = jnp.asarray(doc_len, jnp.int32)
    total = jnp.sum(doc_len).astype(jnp.float32)   # normalizer (original batch)
    dl2 = doc_len.reshape(B, 1)

    # Pad tiny batches up to one sublane group (8 rows) so blocks stay
    # (8,128)-aligned; padded rows get doc_len == 0 -> zero contribution.
    Bp = B
    if B < 8:
        pad = 8 - B
        yt = jnp.pad(yt, ((0, pad), (0, 0)))
        yp = jnp.pad(yp, ((0, pad), (0, 0)), constant_values=1.0)
        dl2 = jnp.pad(dl2, ((0, pad), (0, 0)))
        Bp = 8

    # Per-lane constants for the interleaved layout:
    #   lane l -> channel = l % 2, pair = l // 2, r = pair // D, c = pair % D
    lane = np.arange(L)
    pair = lane // 2
    r = pair // D
    c = pair % D
    lane_m = jnp.asarray(np.maximum(r, c).astype(np.int32).reshape(1, L))
    lane_w = jnp.asarray(
        np.where(lane % 2 == 1, 1.0, float(diminish_factor)).astype(np.float32).reshape(1, L))

    TB = _pick_tb(Bp, L, yt.dtype.itemsize)
    n_steps = -(-Bp // TB)

    const_spec_m = pl.BlockSpec((1, L), lambda s: (0, 0))
    const_spec_w = pl.BlockSpec((1, L), lambda s: (0, 0))
    dl_spec = pl.BlockSpec((TB, 1), lambda s: (s, 0))
    plane_spec = pl.BlockSpec((TB, L), lambda s: (s, 0))
    out_spec = pl.BlockSpec((1, 1, L), lambda s: (s, 0, 0))

    cost = pl.CostEstimate(
        flops=int(8 * Bp * L),
        transcendentals=int(Bp * L),
        bytes_accessed=int(Bp * L * yt.dtype.itemsize + Bp * L * yp.dtype.itemsize
                           + Bp * 4 + n_steps * L * 4),
    )

    partials = pl.pallas_call(
        _make_kernel(TB, Bp),
        out_shape=jax.ShapeDtypeStruct((n_steps, 1, L), jnp.float32),
        grid_spec=pltpu.PrefetchScalarGridSpec(
            num_scalar_prefetch=0,
            grid=(n_steps,),
            in_specs=[const_spec_m, const_spec_w, dl_spec, plane_spec, plane_spec],
            out_specs=out_spec,
        ),
        compiler_params=pltpu.CompilerParams(
            dimension_semantics=("parallel",),     # independent steps -> megacore-shardable
            vmem_limit_bytes=32 << 20,
        ),
        cost_estimate=cost,
    )(lane_m, lane_w, dl2, yt, yp)

    return -jnp.sum(partials) / total


def _reference_loss(y_true, y_pred, doc_len, diminish_factor):
    """Pure-numpy transcription of the torch forward (for verification)."""
    B, DD, _ = y_true.shape
    D = int(round(math.sqrt(DD)))
    yt = np.asarray(y_true, dtype=np.float64).reshape(B, D, D, 2)
    yp = np.asarray(y_pred, dtype=np.float64).reshape(B, D, D, 2)
    dls = np.asarray(doc_len)
    loss = 0.0
    for i in range(B):
        dl = int(dls[i])
        ytm = yt[i, :dl, :dl, :].reshape(-1, 2)
        ypm = yp[i, :dl, :dl, :].reshape(-1, 2)
        pos = -np.sum(np.log(ypm[:, 1][ytm[:, 1] == 1]))
        neg = -np.sum(np.log(ypm[:, 0][ytm[:, 0] == 1])) * diminish_factor
        loss += pos + neg
    return loss / dls.sum()


if __name__ == "__main__":
    key = jax.random.PRNGKey(0)
    B = 2
    D = 8                      # max_doc_len -> interleaved row length = 128 lanes
    diminish_factor = 0.5

    k1, k2 = jax.random.split(key)
    # y_pred: probabilities over the 2 classes (softmax of random logits).
    logits = jax.random.normal(k1, (B, D * D, 2), dtype=jnp.float32)
    y_pred = jax.nn.softmax(logits, axis=-1)
    # y_true: one-hot 0/1 labels per pair.
    ones = jax.random.bernoulli(k2, p=0.3, shape=(B, D * D)).astype(jnp.float32)
    y_true = jnp.stack([1.0 - ones, ones], axis=-1)
    doc_len = jnp.array([5, 7], dtype=jnp.int32)

    loss = ce_loss_pair_pallas(y_true, y_pred, doc_len, diminish_factor)
    loss = jax.block_until_ready(loss)

    ref = _reference_loss(y_true, y_pred, doc_len, diminish_factor)
    assert np.allclose(float(loss), float(ref), rtol=1e-4, atol=1e-5), (float(loss), float(ref))
    print("KERNEL_OK")
</pallas_src>

<mosaic_0001>
module attributes {stable_mosaic.version = 11 : i64} {
  func.func @kernel(%arg0: i32, %arg1: memref<1x128xi32, #tpu.memory_space<vmem>>, %arg2: memref<1x128xf32, #tpu.memory_space<vmem>>, %arg3: memref<8x1xi32, #tpu.memory_space<vmem>>, %arg4: memref<8x128xf32, #tpu.memory_space<vmem>>, %arg5: memref<8x128xf32, #tpu.memory_space<vmem>>, %arg6: memref<1x1x128xf32, #tpu.memory_space<vmem>>) attributes {dimension_semantics = [#tpu.dimension_semantics<parallel>], iteration_bounds = array<i64: 1>, scalar_prefetch = 0 : i64, scratch_operands = 0 : i64, tpu.core_type = #tpu.core_type<tc>, window_params = [{pipeline_mode = #tpu.pipeline_mode<synchronous>, transform_indices = @transform_0, window_bounds = array<i64: 1, 128>}, {pipeline_mode = #tpu.pipeline_mode<synchronous>, transform_indices = @transform_1, window_bounds = array<i64: 1, 128>}, {transform_indices = @transform_2, window_bounds = array<i64: 8, 1>}, {transform_indices = @transform_3, window_bounds = array<i64: 8, 128>}, {transform_indices = @transform_4, window_bounds = array<i64: 8, 128>}, {transform_indices = @transform_5, window_bounds = array<i64: 1, 1, 128>}]} {
    %c0 = arith.constant 0 : index
    %c0_0 = arith.constant 0 : index
    %0 = vector.load %arg4[%c0, %c0_0] : memref<8x128xf32, #tpu.memory_space<vmem>>, vector<8x128xf32>
    %c0_1 = arith.constant 0 : index
    %c0_2 = arith.constant 0 : index
    %1 = vector.load %arg5[%c0_1, %c0_2] : memref<8x128xf32, #tpu.memory_space<vmem>>, vector<8x128xf32>
    %c0_3 = arith.constant 0 : index
    %c0_4 = arith.constant 0 : index
    %2 = vector.load %arg1[%c0_3, %c0_4] : memref<1x128xi32, #tpu.memory_space<vmem>>, vector<1x128xi32>
    %c0_5 = arith.constant 0 : index
    %c0_6 = arith.constant 0 : index
    %3 = vector.load %arg2[%c0_5, %c0_6] : memref<1x128xf32, #tpu.memory_space<vmem>>, vector<1x128xf32>
    %c0_7 = arith.constant 0 : index
    %c0_8 = arith.constant 0 : index
    %4 = vector.load %arg3[%c0_7, %c0_8] : memref<8x1xi32, #tpu.memory_space<vmem>>, vector<8x1xi32>
    %5 = vector.broadcast %2 : vector<1x128xi32> to vector<8x128xi32>
    %6 = vector.broadcast %4 : vector<8x1xi32> to vector<8x128xi32>
    %7 = arith.cmpi slt, %5, %6 : vector<8x128xi32>
    %cst = arith.constant 1.000000e+00 : f32
    %8 = vector.broadcast %cst : f32 to vector<8x128xf32>
    %9 = arith.cmpf oeq, %0, %8 : vector<8x128xf32>
    %10 = arith.andi %7, %9 : vector<8x128xi1>
    %11 = math.log %1 : vector<8x128xf32>
    %12 = vector.broadcast %3 : vector<1x128xf32> to vector<8x128xf32>
    %13 = arith.mulf %12, %11 : vector<8x128xf32>
    %cst_9 = arith.constant 0.000000e+00 : f32
    %14 = vector.broadcast %cst_9 : f32 to vector<8x128xf32>
    %15 = arith.select %10, %13, %14 : vector<8x128xi1>, vector<8x128xf32>
    %cst_10 = arith.constant dense<0.000000e+00> : vector<128xf32>
    %16 = vector.multi_reduction <add>, %15, %cst_10 [0] : vector<8x128xf32> to vector<128xf32>
    %17 = vector.shape_cast %16 : vector<128xf32> to vector<1x128xf32>
    %18 = vector.shape_cast %17 : vector<1x128xf32> to vector<1x1x128xf32>
    %c0_11 = arith.constant 0 : index
    %c0_12 = arith.constant 0 : index
    %c0_13 = arith.constant 0 : index
    %19 = vector.load %arg6[%c0_11, %c0_12, %c0_13] : memref<1x1x128xf32, #tpu.memory_space<vmem>>, vector<1x1x128xf32>
    tpu.vector_store %arg6[%c0_11, %c0_12, %c0_13], %18 {strides = array<i32>} : memref<1x1x128xf32, #tpu.memory_space<vmem>>, vector<1x1x128xf32>,
    return
  }
  func.func @transform_0(%arg0: i32) -> (i32, i32) {
    %c0_i32 = arith.constant 0 : i32
    %c0_i32_0 = arith.constant 0 : i32
    %c0_i32_1 = arith.constant 0 : i32
    return %c0_i32, %c0_i32_0 : i32, i32
  }
  func.func @transform_1(%arg0: i32) -> (i32, i32) {
    %c0_i32 = arith.constant 0 : i32
    %c0_i32_0 = arith.constant 0 : i32
    %c0_i32_1 = arith.constant 0 : i32
    return %c0_i32, %c0_i32_0 : i32, i32
  }
  func.func @transform_2(%arg0: i32) -> (i32, i32) {
    %c0_i32 = arith.constant 0 : i32
    %c0_i32_0 = arith.constant 0 : i32
    return %arg0, %c0_i32 : i32, i32
  }
  func.func @transform_3(%arg0: i32) -> (i32, i32) {
    %c0_i32 = arith.constant 0 : i32
    %c0_i32_0 = arith.constant 0 : i32
    return %arg0, %c0_i32 : i32, i32
  }
  func.func @transform_4(%arg0: i32) -> (i32, i32) {
    %c0_i32 = arith.constant 0 : i32
    %c0_i32_0 = arith.constant 0 : i32
    return %arg0, %c0_i32 : i32, i32
  }
  func.func @transform_5(%arg0: i32) -> (i32, i32, i32) {
    %c0_i32 = arith.constant 0 : i32
    %c0_i32_0 = arith.constant 0 : i32
    %c0_i32_1 = arith.constant 0 : i32
    return %arg0, %c0_i32, %c0_i32_0 : i32, i32, i32
  }
}

</mosaic_0001>

<bundles_post_ra>
// kernel: tpu_custom_call.1
= control target key start
LH: loop header
LB: loop body
LE: loop exit
PB: predicated region body
PF: predicated region fallthrough
CT: control target
= control target key end

     0   :  { %10 = vsyncpa [#allocation3], 0  ;;  %s253_s0 = inlined_call_operand.hbm [shape: s32[1,128], index: 0, kind: input, shape index: {}]   ;;  %s254_s1 = inlined_call_operand.hbm [shape: f32[1,128], index: 1, kind: input, shape index: {}]   ;;  %s255_s2 = inlined_call_operand.vmem [shape: s32[8,1], index: 2, kind: input, shape index: {}]   ;;  %s256_s3 = inlined_call_operand.vmem [shape: f32[8,128], index: 3, kind: input, shape index: {}]   ;;  %s257_s4 = inlined_call_operand.vmem [shape: f32[8,128], index: 4, kind: input, shape index: {}]   ;;  %s258_s5 = inlined_call_operand.hbm [shape: f32[1,1,128], index: 5, kind: output, shape index: {}]  }
   0x1   :  { %11 = vsyncpa [#allocation6], 0 }
   0x2   :  { %12 = vsyncpa [#allocation4], 0  ;;  %s174_s18 = smov [#allocation2]   ;;  %s175_s20 = smov [#allocation5]  }
   0x3   :  { %s19_s19 = sshll.u32 %s174_s18, 4  ;;  %s29_s21 = sshll.u32 %s175_s20, 4  ;;  %s20_s19 = int_to_ptr.vmem [resolvable:$true] %s19_s19  ;;  %s30_s21 = int_to_ptr.vmem [resolvable:$true] %s29_s21 }
   0x4   :  { %s102_s24 = scalar_lea.hbm %s253_s0, 16 }
   0x5   :  { %p103_p0 = scmp.ne.s32.totalorder %s253_s0, %s102_s24  ;;  %p106_p1 = scmp.lt.u32.totalorder %s102_s24, %s253_s0 }
   0x7   :  { %p108_p2 = pnand %p106_p1, %p103_p0 }
   0x9   :  { %111 = shalt.err (!%p108_p2)
}
   0xa   :  { %s112_s29 = scalar_lea.vmem %s20_s19, 16  ;;  %s116_s30 = scalar_lea.vmem %s20_s19, 32 }
   0xb   :  { %p113_p3 = scmp.ne.s32.totalorder %s20_s19, %s112_s29  ;;  %p117_p4 = scmp.lt.s32.totalorder %s20_s19, %s20_s19 }
   0xc   :  { %p118_p5 = scmp.lt.s32.totalorder %s116_s30, %s112_s29 }
   0xe   :  { %p119_p6 = por %p118_p5, %p117_p4 }
  0x10   :  { %p120_p7 = pnand %p119_p6, %p113_p3 }
  0x12   :  { %123 = shalt.err (!%p120_p7)
}
  0x13   :  { %22 = dma.hbm_to_vmem [thread:$0]  %s253_s0, 16, %s20_s19, [#allocation3]  }
  0x14   :  { %s124_s10 = scalar_lea.hbm %s254_s1, 16 }
  0x15   :  { %p125_p8 = scmp.ne.s32.totalorder %s254_s1, %s124_s10  ;;  %p128_p9 = scmp.lt.u32.totalorder %s124_s10, %s254_s1 }
  0x17   :  { %p130_p10 = pnand %p128_p9, %p125_p8 }
  0x19   :  { %133 = shalt.err (!%p130_p10)
}
  0x1a   :  { %s134_s15 = scalar_lea.vmem %s30_s21, 16  ;;  %s138_s16 = scalar_lea.vmem %s30_s21, 32 }
  0x1b   :  { %p135_p11 = scmp.ne.s32.totalorder %s30_s21, %s134_s15  ;;  %p139_p12 = scmp.lt.s32.totalorder %s30_s21, %s30_s21 }
  0x1c   :  { %p140_p13 = scmp.lt.s32.totalorder %s138_s16, %s134_s15 }
  0x1e   :  { %p141_p0 = por %p140_p13, %p139_p12 }
  0x20   :  { %p142_p1 = pnand %p141_p0, %p135_p11 }
  0x22   :  { %145 = shalt.err (!%p142_p1)
}
  0x23   :  { %32 = dma.hbm_to_vmem [thread:$0]  %s254_s1, 16, %s30_s21, [#allocation6]  }
  0x24   :  { %168 = dma.done.wait [#allocation3], 16  }
  0x25   :  { %169 = vsyncadd [#allocation3], 4294967280 }
  0x26   :  { %170 = dma.done.wait [#allocation6], 16  }
  0x27   :  { %171 = vsyncadd [#allocation6], 4294967280  ;;  %v176_v0 = vmov 0   ;;  %v49_v1 = vld [vmem:[%s255_s2] sm:$0xff]  ;;  %s177_s2 = smov [#allocation7]  }
  0x28   :  { %99 = vset.pattern.permute.xlu0 %v176_v0  ;;  %v46_v2 = vld [vmem:[%s257_s4] sm:$0xff]  ;;  %s83_s4 = sshll.u32 %s177_s2, 4  ;;  %s84_s4 = int_to_ptr.vmem [resolvable:$true] %s83_s4 }
  0x29   :  { %55 = vperm.xlu0 %99, %v49_v1   ;;  %100 = vlog2.f32 %v46_v2  ;;  %v45_v5 = vld [vmem:[%s256_s3] sm:$0xff]  ;;  %s146_s21 = scalar_lea.vmem %s84_s4, 16  ;;  %s150_s3 = scalar_lea.vmem %s84_s4, 32 }
  0x2a   :  { %v94_v6 = vld [vmem:[#allocation5] ss:$0 sm:$0xff]  ;;  %v93_v7 = vld [vmem:[#allocation2] ss:$0 sm:$0xff]  ;;  %vm58_vm0 = vcmp.eq.f32.partialorder %v45_v5, 1.0  ;;  %p147_p2 = scmp.ne.s32.totalorder %s84_s4, %s146_s21  ;;  %p151_p3 = scmp.lt.s32.totalorder %s84_s4, %s84_s4 }
  0x2b   :  { %p152_p4 = scmp.lt.s32.totalorder %s150_s3, %s146_s21 }
  0x2d   :  { %p153_p5 = por %p152_p4, %p151_p3 }
  0x2f   :  { %p154_p6 = pnand %p153_p5, %p147_p2 }
  0x33   :  { %v101_v3 = vpop.eup %100 }
  0x34   :  { %v61_v4 = vmul.f32 0.6931472, %v101_v3 }
  0x36   :  { %v68_v8 = vmul.f32 %v94_v6, %v61_v4 }
  0xa8   :  { %v56_v9 = vpop.permute.xlu0 %55 }
  0xa9   :  { %vm57_vm1 = vcmp.lt.s32.totalorder %v93_v7, %v56_v9 }
  0xaa   :  { %vm59_vm2 = vmand %vm57_vm1, %vm58_vm0 }
  0xab   :  { %v69_v10 = vsel %vm59_vm2, %v68_v8, 0.0 }
  0xac   :  { %v70_v11 = vrot.slane %v69_v10, 4 }
  0xae   :  { %v71_v12 = vadd.f32 %v70_v11, %v69_v10 }
  0xb0   :  { %v72_v13 = vrot.slane %v71_v12, 2 }
  0xb2   :  { %v73_v14 = vadd.f32 %v72_v13, %v71_v12 }
  0xb4   :  { %v74_v15 = vrot.slane %v73_v14, 1 }
  0xb6   :  { %v75_v16 = vadd.f32 %v74_v15, %v73_v14 }
  0xb8   :  { %76 = vst [vmem:[#allocation7] sm:$0x1] %v75_v16 }
  0xb9   :  { %157 = shalt.err (!%p154_p6)
}
  0xba   :  { %s158_s26 = scalar_lea.hbm %s258_s5, 16 }
  0xbb   :  { %p159_p7 = scmp.ne.s32.totalorder %s258_s5, %s158_s26  ;;  %p162_p8 = scmp.lt.u32.totalorder %s158_s26, %s258_s5 }
  0xbd   :  { %p164_p9 = pnand %p162_p8, %p159_p7 }
  0xbf   :  { %167 = shalt.err (!%p164_p9)
}
  0xc0   :  { %86 = dma.vmem_to_hbm [thread:$0]  %s84_s4, 16, %s258_s5, [#allocation4]  }
  0xc1   :  { %172 = dma.done.wait [#allocation4], 16  }
  0xc2   :  { %173 = vsyncadd [#allocation4], 4294967280 }
  0xc3   :  { %90 = vsyncpa [#allocation3], 1 }
  0xc4   :  { %91 = vsyncpa [#allocation6], 1 }
  0xc5   :  { %92 = vsyncpa [#allocation4], 1 }

</bundles_post_ra>
